<compile_context>
chip_gen: v6e
topology: v6e:2x2x1
jax: 0.10.0
libtpu: 0.0.40
codegen_flags: <defaults>
</compile_context>

<pallas_src>
import jax
import jax.numpy as jnp
from jax.experimental import pallas as pl
from jax.experimental.pallas import tpu as pltpu


def _round_up(n, m):
    return ((n + m - 1) // m) * m


def _generator_kernel(x_ref, w1_ref, b1_ref, w2_ref, b2_ref, w3_ref, b3_ref,
                      o_ref):
    x = x_ref[...]                                   # (TM, K_pad) bf16

    # Layer 1: Linear + LeakyReLU(0.2)   (Dropout = identity in eval mode)
    h = jnp.dot(x, w1_ref[...], preferred_element_type=jnp.float32)
    h = h + b1_ref[...]                              # f32 bias, f32 activations
    h = jnp.maximum(h, 0.2 * h)

    # Layer 2: Linear + LeakyReLU(0.2)   (Dropout = identity in eval mode)
    h = jnp.dot(h.astype(jnp.bfloat16), w2_ref[...],
                preferred_element_type=jnp.float32)
    h = h + b2_ref[...]
    h = jnp.maximum(h, 0.2 * h)

    # Layer 3: Linear + Sigmoid  (EUP exp + EUP approx reciprocal)
    h = jnp.dot(h.astype(jnp.bfloat16), w3_ref[...],
                preferred_element_type=jnp.float32)
    h = h + b3_ref[...]
    o_ref[...] = pl.reciprocal(1.0 + jnp.exp(-h), approx=True).astype(o_ref.dtype)


def aae_mnist_generator(x, params):
    """x: (B, latent_size) float32.  params: dict of transposed weights/biases.

    Weights are (in_features, out_features) = torch weight^T; biases (1, out).
    """
    w1, b1, w2, b2, w3, b3 = (params["w1"], params["b1"], params["w2"],
                              params["b2"], params["w3"], params["b3"])
    B, K = x.shape
    N = w3.shape[1]                                   # out_channels

    # Lane-dense padding (zeros -> numerically inert, sliced off at the end).
    K_pad = _round_up(K, 128)
    N_pad = _round_up(N, 128)

    # Batch tile: multiple of 8 sublanes, capped at 256 (v6e/v7x MXU M dim).
    TM = min(256, _round_up(B, 8))
    B_pad = _round_up(B, TM)

    f32, bf16 = jnp.float32, jnp.bfloat16
    x_p = jnp.zeros((B_pad, K_pad), bf16).at[:B, :K].set(x.astype(bf16))
    w1_p = jnp.zeros((K_pad, N_pad), bf16).at[:K, :N].set(w1.astype(bf16))
    w2_p = jnp.zeros((N_pad, N_pad), bf16).at[:N, :N].set(w2.astype(bf16))
    w3_p = jnp.zeros((N_pad, N_pad), bf16).at[:N, :N].set(w3.astype(bf16))
    b1_p = jnp.zeros((1, N_pad), f32).at[:, :N].set(b1.astype(f32))
    b2_p = jnp.zeros((1, N_pad), f32).at[:, :N].set(b2.astype(f32))
    b3_p = jnp.zeros((1, N_pad), f32).at[:, :N].set(b3.astype(f32))

    # VMEM budget: resident bf16 weights + f32 biases, double-buffered x/out
    # tiles, plus f32 intermediates; 2x safety margin, clamped to sane limits.
    weight_bytes = 2 * (K_pad * N_pad + 2 * N_pad * N_pad) + 4 * 3 * N_pad
    tile_bytes = 2 * (TM * K_pad * 2 + TM * N_pad * 4)      # double-buffered
    scratch_bytes = 4 * TM * N_pad * 4                       # f32 temporaries
    vmem_limit = int(min(100 * 1024 * 1024,
                         max(32 * 1024 * 1024,
                             2 * (weight_bytes + tile_bytes + scratch_bytes))))

    row_map = lambda i: (i, 0)     # x / out: walk the batch tiles
    const_map = lambda i: (0, 0)   # weights / biases: resident across grid

    out = pl.pallas_call(
        _generator_kernel,
        out_shape=jax.ShapeDtypeStruct((B_pad, N_pad), jnp.float32),
        grid=(B_pad // TM,),
        in_specs=[
            pl.BlockSpec((TM, K_pad), row_map),
            pl.BlockSpec((K_pad, N_pad), const_map),
            pl.BlockSpec((1, N_pad), const_map),
            pl.BlockSpec((N_pad, N_pad), const_map),
            pl.BlockSpec((1, N_pad), const_map),
            pl.BlockSpec((N_pad, N_pad), const_map),
            pl.BlockSpec((1, N_pad), const_map),
        ],
        out_specs=pl.BlockSpec((TM, N_pad), row_map),
        compiler_params=pltpu.CompilerParams(
            dimension_semantics=("parallel",),
            vmem_limit_bytes=vmem_limit),
    )(x_p, w1_p, b1_p, w2_p, b2_p, w3_p, b3_p)

    return out[:B, :N]


def init_params(key, latent_size, out_channels):
    """Deterministic parameter init (uniform like torch's default Linear init).

    Weights stored as (in_features, out_features) = torch weight^T, f32.
    Biases are (1, out_features).
    """
    ks = jax.random.split(key, 6)

    def linear(kw, kb, fan_in, fan_out):
        bound = 1.0 / (fan_in ** 0.5)
        w = jax.random.uniform(kw, (fan_in, fan_out), jnp.float32,
                               minval=-bound, maxval=bound)
        b = jax.random.uniform(kb, (1, fan_out), jnp.float32,
                               minval=-bound, maxval=bound)
        return w, b

    w1, b1 = linear(ks[0], ks[1], latent_size, out_channels)
    w2, b2 = linear(ks[2], ks[3], out_channels, out_channels)
    w3, b3 = linear(ks[4], ks[5], out_channels, out_channels)
    return {"w1": w1, "b1": b1, "w2": w2, "b2": b2, "w3": w3, "b3": b3}


def reference_forward(x, params):
    """Pure-JAX f32 reference of the PyTorch forward (eval-mode dropout)."""
    h = x @ params["w1"] + params["b1"]
    h = jnp.where(h > 0, h, 0.2 * h)
    h = h @ params["w2"] + params["b2"]
    h = jnp.where(h > 0, h, 0.2 * h)
    h = h @ params["w3"] + params["b3"]
    return jax.nn.sigmoid(h)


if __name__ == "__main__":
    batch = 2
    latent_size = 8
    out_channels = 32

    key = jax.random.PRNGKey(0)
    k_x, k_p = jax.random.split(key)
    x = jax.random.normal(k_x, (batch, latent_size), jnp.float32)
    params = init_params(k_p, latent_size, out_channels)

    out = aae_mnist_generator(x, params)
    out = jax.block_until_ready(out)

    ref = reference_forward(x, params)
    assert out.shape == (batch, out_channels)
    # bf16 matmul path + approx reciprocal -> compare with a relaxed tolerance
    # against the f32 reference (sigmoid outputs are O(1)).
    assert jnp.allclose(out, ref, atol=2e-2, rtol=2e-2), "mismatch vs reference"

    print("KERNEL_OK")
</pallas_src>

<mosaic_0001>
module attributes {stable_mosaic.version = 11 : i64} {
  func.func @_generator_kernel(%arg0: i32, %arg1: memref<8x128xbf16, #tpu.memory_space<vmem>>, %arg2: memref<128x128xbf16, #tpu.memory_space<vmem>>, %arg3: memref<1x128xf32, #tpu.memory_space<vmem>>, %arg4: memref<128x128xbf16, #tpu.memory_space<vmem>>, %arg5: memref<1x128xf32, #tpu.memory_space<vmem>>, %arg6: memref<128x128xbf16, #tpu.memory_space<vmem>>, %arg7: memref<1x128xf32, #tpu.memory_space<vmem>>, %arg8: memref<8x128xf32, #tpu.memory_space<vmem>>) attributes {dimension_semantics = [#tpu.dimension_semantics<parallel>], iteration_bounds = array<i64: 1>, scalar_prefetch = 0 : i64, scratch_operands = 0 : i64, tpu.core_type = #tpu.core_type<tc>, window_params = [{transform_indices = @transform_0, window_bounds = array<i64: 8, 128>}, {pipeline_mode = #tpu.pipeline_mode<synchronous>, transform_indices = @transform_1, window_bounds = array<i64: 128, 128>}, {pipeline_mode = #tpu.pipeline_mode<synchronous>, transform_indices = @transform_2, window_bounds = array<i64: 1, 128>}, {pipeline_mode = #tpu.pipeline_mode<synchronous>, transform_indices = @transform_3, window_bounds = array<i64: 128, 128>}, {pipeline_mode = #tpu.pipeline_mode<synchronous>, transform_indices = @transform_4, window_bounds = array<i64: 1, 128>}, {pipeline_mode = #tpu.pipeline_mode<synchronous>, transform_indices = @transform_5, window_bounds = array<i64: 128, 128>}, {pipeline_mode = #tpu.pipeline_mode<synchronous>, transform_indices = @transform_6, window_bounds = array<i64: 1, 128>}, {transform_indices = @transform_7, window_bounds = array<i64: 8, 128>}]} {
    %c0 = arith.constant 0 : index
    %c0_0 = arith.constant 0 : index
    %0 = vector.load %arg1[%c0, %c0_0] : memref<8x128xbf16, #tpu.memory_space<vmem>>, vector<8x128xbf16>
    %c0_1 = arith.constant 0 : index
    %c0_2 = arith.constant 0 : index
    %1 = vector.load %arg2[%c0_1, %c0_2] : memref<128x128xbf16, #tpu.memory_space<vmem>>, vector<128x128xbf16>
    %cst = arith.constant dense<0.000000e+00> : vector<8x128xf32>
    %2 = tpu.matmul %0, %1, %cst {dimension_numbers = #tpu.dot_dimension_numbers<[1], [0], [0], [1], [0, 0, 1, 1], [], []>} : vector<8x128xbf16>, vector<128x128xbf16>, vector<8x128xf32> -> vector<8x128xf32>
    %c0_3 = arith.constant 0 : index
    %c0_4 = arith.constant 0 : index
    %3 = vector.load %arg3[%c0_3, %c0_4] : memref<1x128xf32, #tpu.memory_space<vmem>>, vector<1x128xf32>
    %4 = vector.broadcast %3 : vector<1x128xf32> to vector<8x128xf32>
    %5 = arith.addf %2, %4 : vector<8x128xf32>
    %cst_5 = arith.constant 2.000000e-01 : f32
    %6 = vector.broadcast %cst_5 : f32 to vector<8x128xf32>
    %7 = arith.mulf %6, %5 : vector<8x128xf32>
    %8 = arith.maximumf %5, %7 : vector<8x128xf32>
    %9 = arith.truncf %8 : vector<8x128xf32> to vector<8x128xbf16>
    %c0_6 = arith.constant 0 : index
    %c0_7 = arith.constant 0 : index
    %10 = vector.load %arg4[%c0_6, %c0_7] : memref<128x128xbf16, #tpu.memory_space<vmem>>, vector<128x128xbf16>
    %cst_8 = arith.constant dense<0.000000e+00> : vector<8x128xf32>
    %11 = tpu.matmul %9, %10, %cst_8 {dimension_numbers = #tpu.dot_dimension_numbers<[1], [0], [0], [1], [0, 0, 1, 1], [], []>} : vector<8x128xbf16>, vector<128x128xbf16>, vector<8x128xf32> -> vector<8x128xf32>
    %c0_9 = arith.constant 0 : index
    %c0_10 = arith.constant 0 : index
    %12 = vector.load %arg5[%c0_9, %c0_10] : memref<1x128xf32, #tpu.memory_space<vmem>>, vector<1x128xf32>
    %13 = vector.broadcast %12 : vector<1x128xf32> to vector<8x128xf32>
    %14 = arith.addf %11, %13 : vector<8x128xf32>
    %cst_11 = arith.constant 2.000000e-01 : f32
    %15 = vector.broadcast %cst_11 : f32 to vector<8x128xf32>
    %16 = arith.mulf %15, %14 : vector<8x128xf32>
    %17 = arith.maximumf %14, %16 : vector<8x128xf32>
    %18 = arith.truncf %17 : vector<8x128xf32> to vector<8x128xbf16>
    %c0_12 = arith.constant 0 : index
    %c0_13 = arith.constant 0 : index
    %19 = vector.load %arg6[%c0_12, %c0_13] : memref<128x128xbf16, #tpu.memory_space<vmem>>, vector<128x128xbf16>
    %cst_14 = arith.constant dense<0.000000e+00> : vector<8x128xf32>
    %20 = tpu.matmul %18, %19, %cst_14 {dimension_numbers = #tpu.dot_dimension_numbers<[1], [0], [0], [1], [0, 0, 1, 1], [], []>} : vector<8x128xbf16>, vector<128x128xbf16>, vector<8x128xf32> -> vector<8x128xf32>
    %c0_15 = arith.constant 0 : index
    %c0_16 = arith.constant 0 : index
    %21 = vector.load %arg7[%c0_15, %c0_16] : memref<1x128xf32, #tpu.memory_space<vmem>>, vector<1x128xf32>
    %22 = vector.broadcast %21 : vector<1x128xf32> to vector<8x128xf32>
    %23 = arith.addf %20, %22 : vector<8x128xf32>
    %cst_17 = arith.constant 0.000000e+00 : f32
    %24 = vector.broadcast %cst_17 : f32 to vector<8x128xf32>
    %25 = arith.subf %24, %23 : vector<8x128xf32>
    %26 = math.exp %25 : vector<8x128xf32>
    %cst_18 = arith.constant 1.000000e+00 : f32
    %27 = vector.broadcast %cst_18 : f32 to vector<8x128xf32>
    %28 = arith.addf %27, %26 : vector<8x128xf32>
    %29 = tpu.reciprocal %28 {approx = true} : vector<8x128xf32> -> vector<8x128xf32>
    %c0_19 = arith.constant 0 : index
    %c0_20 = arith.constant 0 : index
    %30 = vector.load %arg8[%c0_19, %c0_20] : memref<8x128xf32, #tpu.memory_space<vmem>>, vector<8x128xf32>
    tpu.vector_store %arg8[%c0_19, %c0_20], %29 {strides = array<i32>} : memref<8x128xf32, #tpu.memory_space<vmem>>, vector<8x128xf32>,
    return
  }
  func.func @transform_0(%arg0: i32) -> (i32, i32) {
    %c0_i32 = arith.constant 0 : i32
    %c0_i32_0 = arith.constant 0 : i32
    return %arg0, %c0_i32 : i32, i32
  }
  func.func @transform_1(%arg0: i32) -> (i32, i32) {
    %c0_i32 = arith.constant 0 : i32
    %c0_i32_0 = arith.constant 0 : i32
    %c0_i32_1 = arith.constant 0 : i32
    return %c0_i32, %c0_i32_0 : i32, i32
  }
  func.func @transform_2(%arg0: i32) -> (i32, i32) {
    %c0_i32 = arith.constant 0 : i32
    %c0_i32_0 = arith.constant 0 : i32
    %c0_i32_1 = arith.constant 0 : i32
    return %c0_i32, %c0_i32_0 : i32, i32
  }
  func.func @transform_3(%arg0: i32) -> (i32, i32) {
    %c0_i32 = arith.constant 0 : i32
    %c0_i32_0 = arith.constant 0 : i32
    %c0_i32_1 = arith.constant 0 : i32
    return %c0_i32, %c0_i32_0 : i32, i32
  }
  func.func @transform_4(%arg0: i32) -> (i32, i32) {
    %c0_i32 = arith.constant 0 : i32
    %c0_i32_0 = arith.constant 0 : i32
    %c0_i32_1 = arith.constant 0 : i32
    return %c0_i32, %c0_i32_0 : i32, i32
  }
  func.func @transform_5(%arg0: i32) -> (i32, i32) {
    %c0_i32 = arith.constant 0 : i32
    %c0_i32_0 = arith.constant 0 : i32
    %c0_i32_1 = arith.constant 0 : i32
    return %c0_i32, %c0_i32_0 : i32, i32
  }
  func.func @transform_6(%arg0: i32) -> (i32, i32) {
    %c0_i32 = arith.constant 0 : i32
    %c0_i32_0 = arith.constant 0 : i32
    %c0_i32_1 = arith.constant 0 : i32
    return %c0_i32, %c0_i32_0 : i32, i32
  }
  func.func @transform_7(%arg0: i32) -> (i32, i32) {
    %c0_i32 = arith.constant 0 : i32
    %c0_i32_0 = arith.constant 0 : i32
    return %arg0, %c0_i32 : i32, i32
  }
}

</mosaic_0001>

<bundles_post_ra>
// kernel: tpu_custom_call.1
= control target key start
LH: loop header
LB: loop body
LE: loop exit
PB: predicated region body
PF: predicated region fallthrough
CT: control target
= control target key end

     0   :  { %12 = vsyncpa [#allocation3], 0  ;;  %s815_s0 = inlined_call_operand.hbm [shape: bf16[8,128], index: 0, kind: input, shape index: {}]   ;;  %s816_s1 = inlined_call_operand.hbm [shape: bf16[128,128], index: 1, kind: input, shape index: {}]   ;;  %s817_s2 = inlined_call_operand.vmem [shape: f32[1,128], index: 2, kind: input, shape index: {}]   ;;  %s818_s3 = inlined_call_operand.hbm [shape: bf16[128,128], index: 3, kind: input, shape index: {}]   ;;  %s819_s4 = inlined_call_operand.vmem [shape: f32[1,128], index: 4, kind: input, shape index: {}]   ;;  %s820_s5 = inlined_call_operand.hbm [shape: bf16[128,128], index: 5, kind: input, shape index: {}]   ;;  %s821_s6 = inlined_call_operand.vmem [shape: f32[1,128], index: 6, kind: input, shape index: {}]   ;;  %s822_s7 = inlined_call_operand.hbm [shape: f32[8,128], index: 7, kind: output, shape index: {}]  }
   0x1   :  { %13 = vsyncpa [#allocation6], 0 }
   0x2   :  { %14 = vsyncpa [#allocation9], 0 }
   0x3   :  { %15 = vsyncpa [#allocation4], 0  ;;  %s703_s24 = smov [#allocation5]  }
   0x4   :  { %s31_s25 = sshll.u32 %s703_s24, 4  ;;  %s32_s25 = int_to_ptr.vmem [resolvable:$true] %s31_s25 }
   0x5   :  { %s603_s26 = scalar_lea.vmem %s32_s25, 1024  ;;  %p608_p1 = scmp.lt.s32.totalorder %s32_s25, %s32_s25 }
   0x6   :  { %p604_p0 = scmp.ne.s32.totalorder %s32_s25, %s603_s26  ;;  %p609_p2 = scmp.lt.s32.totalorder %s603_s26, %s603_s26 }
   0x8   :  { %p610_p3 = por %p609_p2, %p608_p1 }
   0xa   :  { %p611_p4 = pnand %p610_p3, %p604_p0 }
   0xc   :  { %614 = shalt.err (!%p611_p4)
}
   0xd   :  { %s704_s27 = smov 64   ;;  %s705_s28 = smov 4  }
   0xe   :  { %37 = dma.hbm_to_vmem [thread:$0]  %s816_s1, 1024, %s32_s25, [#allocation6], %s704_s27, %s704_s27, %s705_s28  }
   0xf   :  { %s706_s8 = smov [#allocation2]   ;;  %s707_s10 = smov [#allocation7]  }
  0x10   :  { %s22_s9 = sshll.u32 %s706_s8, 4  ;;  %s45_s11 = sshll.u32 %s707_s10, 4  ;;  %s23_s9 = int_to_ptr.vmem [resolvable:$true] %s22_s9  ;;  %s46_s11 = int_to_ptr.vmem [resolvable:$true] %s45_s11 }
  0x11   :  { %s623_s12 = scalar_lea.vmem %s23_s9, 64  ;;  %p628_p6 = scmp.lt.s32.totalorder %s23_s9, %s23_s9 }
  0x12   :  { %p624_p5 = scmp.ne.s32.totalorder %s23_s9, %s623_s12  ;;  %p629_p7 = scmp.lt.s32.totalorder %s623_s12, %s623_s12 }
  0x14   :  { %p630_p8 = por %p629_p7, %p628_p6 }
  0x16   :  { %p631_p9 = pnand %p630_p8, %p624_p5 }
  0x18   :  { %634 = shalt.err (!%p631_p9)
}
  0x19   :  { %25 = dma.hbm_to_vmem [thread:$0]  %s815_s0, 64, %s23_s9, [#allocation3]  }
  0x1a   :  { %s643_s15 = scalar_lea.vmem %s46_s11, 1024  ;;  %p648_p11 = scmp.lt.s32.totalorder %s46_s11, %s46_s11 }
  0x1b   :  { %p644_p10 = scmp.ne.s32.totalorder %s46_s11, %s643_s15  ;;  %p649_p12 = scmp.lt.s32.totalorder %s643_s15, %s643_s15 }
  0x1d   :  { %p650_p13 = por %p649_p12, %p648_p11 }
  0x1f   :  { %p651_p0 = pnand %p650_p13, %p644_p10 }
  0x21   :  { %654 = shalt.err (!%p651_p0)
}
  0x22   :  { %51 = dma.hbm_to_vmem [thread:$0]  %s818_s3, 1024, %s46_s11, [#allocation6], %s704_s27, %s704_s27, %s705_s28  }
  0x23   :  { %s708_s17 = smov [#allocation8]  }
  0x24   :  { %s59_s18 = sshll.u32 %s708_s17, 4  ;;  %s60_s18 = int_to_ptr.vmem [resolvable:$true] %s59_s18 }
  0x25   :  { %s663_s19 = scalar_lea.vmem %s60_s18, 1024  ;;  %p668_p2 = scmp.lt.s32.totalorder %s60_s18, %s60_s18 }
  0x26   :  { %p664_p1 = scmp.ne.s32.totalorder %s60_s18, %s663_s19  ;;  %p669_p3 = scmp.lt.s32.totalorder %s663_s19, %s663_s19 }
  0x28   :  { %p670_p4 = por %p669_p3, %p668_p2 }
  0x2a   :  { %p671_p5 = pnand %p670_p4, %p664_p1 }
  0x2c   :  { %674 = shalt.err (!%p671_p5)
}
  0x2d   :  { %65 = dma.hbm_to_vmem [thread:$0]  %s820_s5, 1024, %s60_s18, [#allocation9], %s704_s27, %s704_s27, %s705_s28  }
  0x2e   :  { %695 = dma.done.wait [#allocation3], 64  }
  0x2f   :  { %696 = vsyncadd [#allocation3], 4294967232 }
  0x30   :  { %697 = dma.done.wait [#allocation6], 2048  }
  0x31   :  { %698 = vsyncadd [#allocation6], 4294965248 }
  0x32   :  { %699 = dma.done.wait [#allocation9], 1024  }
  0x33   :  { %700 = vsyncadd [#allocation9], 4294966272  ;;  %v709_v0 = vmov 0.0   ;;  %vm710_vm0 = vmmov 0   ;;  %v567_v1 = vld [vmem:[#allocation5 + $0x38] sm:$0xff]   ;;  %v568_v2 = vld [vmem:[#allocation5 + $0x30] sm:$0xff]  }
  0x34   :  { %498 = vmatprep.subr.bf16.mxu0 %v709_v0  ;;  %514 = vmatprep.mubr.msk.bf16.mxu0 %vm710_vm0, %v709_v0  ;;  %v569_v3 = vld [vmem:[#allocation5 + $0x28] sm:$0xff]   ;;  %v575_v4 = vld [vmem:[#allocation7 + $0x38] sm:$0xff]   ;;  %v570_v5 = vld [vmem:[#allocation5 + $0x20] sm:$0xff]  }
  0x35   :  { %518 = vmatprep.subr.bf16.mxu1 %v709_v0  ;;  %534 = vmatprep.mubr.msk.bf16.mxu1 %vm710_vm0, %v709_v0  ;;  %v576_v6 = vld [vmem:[#allocation7 + $0x30] sm:$0xff]   ;;  %v571_v7 = vld [vmem:[#allocation5 + $0x18] sm:$0xff]   ;;  %v577_v8 = vld [vmem:[#allocation7 + $0x28] sm:$0xff]  }
  0x36   :  { %499 = vmatpush3.bf16.msra.mxu0 %v567_v1  ;;  %519 = vmatpush3.bf16.msra.mxu1 %v575_v4  ;;  %v572_v9 = vld [vmem:[#allocation5 + $0x10] sm:$0xff]   ;;  %v578_v10 = vld [vmem:[#allocation7 + $0x20] sm:$0xff]   ;;  %v573_v11 = vld [vmem:[#allocation5 + $0x8] sm:$0xff]  }
  0x37   :  { %500 = vmatprep.subr.bf16.mxu0 %v709_v0  ;;  %520 = vmatprep.subr.bf16.mxu1 %v709_v0  ;;  %v579_v12 = vld [vmem:[#allocation7 + $0x18] sm:$0xff]   ;;  %v574_v13 = vld [vmem:[#allocation5] sm:$0xff]   ;;  %v580_v14 = vld [vmem:[#allocation7 + $0x10] sm:$0xff]  }
  0x38   :  { %v81_v15 = vld [vmem:[#allocation2] sm:$0xf]  ;;  %v581_v16 = vld [vmem:[#allocation7 + $0x8] sm:$0xff]   ;;  %v582_v17 = vld [vmem:[#allocation7] sm:$0xff]  }
  0x39   :  { %v583_v18 = vld [vmem:[#allocation8 + $0x38] sm:$0xff]   ;;  %v584_v19 = vld [vmem:[#allocation8 + $0x30] sm:$0xff]   ;;  %v585_v20 = vld [vmem:[#allocation8 + $0x28] sm:$0xff]  }
  0x3a   :  { %501 = vmatpush3.bf16.msra.mxu0 %v568_v2  ;;  %521 = vmatpush3.bf16.msra.mxu1 %v576_v6  ;;  %v586_v21 = vld [vmem:[#allocation8 + $0x20] sm:$0xff]   ;;  %v587_v22 = vld [vmem:[#allocation8 + $0x18] sm:$0xff]   ;;  %v588_v23 = vld [vmem:[#allocation8 + $0x10] sm:$0xff]  }
  0x3b   :  { %502 = vmatprep.subr.bf16.mxu0 %v709_v0  ;;  %522 = vmatprep.subr.bf16.mxu1 %v709_v0  ;;  %v444_v24 = vld [vmem:[%s817_s2] ss:$0 sm:$0xff]  ;;  %v589_v33 = vld [vmem:[#allocation8 + $0x8] sm:$0xff]   ;;  %v590_v34 = vld [vmem:[#allocation8] sm:$0xff]  }
  0x3c   :  { %v453_v35 = vld [vmem:[%s819_s4] ss:$0 sm:$0xff]  ;;  %s711_s4 = smov [#allocation10]  }
  0x3d   :  { %v462_v44 = vld [vmem:[%s821_s6] ss:$0 sm:$0xff]  ;;  %s433_s24 = sshll.u32 %s711_s4, 4  ;;  %s434_s24 = int_to_ptr.vmem [resolvable:$true] %s433_s24 }
  0x3e   :  { %503 = vmatpush3.bf16.msra.mxu0 %v569_v3  ;;  %523 = vmatpush3.bf16.msra.mxu1 %v577_v8  ;;  %s675_s25 = scalar_lea.vmem %s434_s24, 128  ;;  %p680_p7 = scmp.lt.s32.totalorder %s434_s24, %s434_s24 }
  0x3f   :  { %504 = vmatprep.subr.bf16.mxu0 %v709_v0  ;;  %524 = vmatprep.subr.bf16.mxu1 %v709_v0  ;;  %p676_p6 = scmp.ne.s32.totalorder %s434_s24, %s675_s25  ;;  %p681_p8 = scmp.lt.s32.totalorder %s675_s25, %s675_s25 }
  0x41   :  { %p682_p9 = por %p681_p8, %p680_p7 }
  0x42   :  { %505 = vmatpush3.bf16.msra.mxu0 %v570_v5  ;;  %525 = vmatpush3.bf16.msra.mxu1 %v578_v10 }
  0x43   :  { %506 = vmatprep.subr.bf16.mxu0 %v709_v0  ;;  %526 = vmatprep.subr.bf16.mxu1 %v709_v0  ;;  %p683_p10 = pnand %p682_p9, %p676_p6 }
  0x46   :  { %507 = vmatpush3.bf16.msra.mxu0 %v571_v7  ;;  %527 = vmatpush3.bf16.msra.mxu1 %v579_v12 }
  0x47   :  { %508 = vmatprep.subr.bf16.mxu0 %v709_v0  ;;  %528 = vmatprep.subr.bf16.mxu1 %v709_v0 }
  0x4a   :  { %509 = vmatpush3.bf16.msra.mxu0 %v572_v9  ;;  %529 = vmatpush3.bf16.msra.mxu1 %v580_v14 }
  0x4b   :  { %510 = vmatprep.subr.bf16.mxu0 %v709_v0  ;;  %530 = vmatprep.subr.bf16.mxu1 %v709_v0 }
  0x4e   :  { %511 = vmatpush3.bf16.msra.mxu0 %v573_v11  ;;  %531 = vmatpush3.bf16.msra.mxu1 %v581_v16 }
  0x4f   :  { %512 = vmatprep.subr.bf16.mxu0 %v709_v0  ;;  %532 = vmatprep.subr.bf16.mxu1 %v709_v0 }
  0x52   :  { %513 = vmatpush3.bf16.msra.mxu0 %v574_v13  ;;  %533 = vmatpush3.bf16.msra.mxu1 %v582_v17 }
  0x53   :  { %538 = vmatprep.subr.bf16.mxu0 %v709_v0 }
  0x55   :  { %515 = vmatmul.mubr.bf16.vlgmr.msra.gmra.mxu0 %v81_v15 }
  0x56   :  { %554 = vmatprep.mubr.msk.bf16.mxu0 %vm710_vm0, %v709_v0  ;;  %539 = vmatpush3.bf16.msra.mxu0 %v583_v18 }
  0x57   :  { %540 = vmatprep.subr.bf16.mxu0 %v709_v0 }
  0x5a   :  { %541 = vmatpush3.bf16.msra.mxu0 %v584_v19 }
  0x5b   :  { %542 = vmatprep.subr.bf16.mxu0 %v709_v0 }
  0x5e   :  { %543 = vmatpush3.bf16.msra.mxu0 %v585_v20 }
  0x5f   :  { %544 = vmatprep.subr.bf16.mxu0 %v709_v0 }
  0x62   :  { %545 = vmatpush3.bf16.msra.mxu0 %v586_v21 }
  0x63   :  { %546 = vmatprep.subr.bf16.mxu0 %v709_v0 }
  0x66   :  { %547 = vmatpush3.bf16.msra.mxu0 %v587_v22 }
  0x67   :  { %548 = vmatprep.subr.bf16.mxu0 %v709_v0 }
  0x6a   :  { %549 = vmatpush3.bf16.msra.mxu0 %v588_v23 }
  0x6b   :  { %550 = vmatprep.subr.bf16.mxu0 %v709_v0 }
  0x6e   :  { %551 = vmatpush3.bf16.msra.mxu0 %v589_v33 }
  0x6f   :  { %552 = vmatprep.subr.bf16.mxu0 %v709_v0 }
  0x72   :  { %553 = vmatpush3.bf16.msra.mxu0 %v590_v34 }
 0x115   :  { %v187_v25 = vpop.f32.mrf.mxu0 }
 0x116   :  { %v188_v26 = vadd.f32 %v444_v24, %v187_v25 }
 0x117   :  { %v516_v27 = vpop.f32.mrf.mxu0 }
 0x118   :  { %v193_v28 = vmul.f32 0.2, %v188_v26 }
 0x119   :  { %v190_v29 = vpop.f32.mrf.mxu0 }
 0x11a   :  { %v194_v30 = vmax.f32 %v188_v26, %v193_v28 }
 0x11b   :  { %v517_v31 = vpop.f32.mrf.mxu0 }
 0x11c   :  { %v195_v32 = vpack.c.bf16 %v194_v30, %v194_v30 }
 0x11e   :  { %535 = vmatmul.mubr.bf16.vlgmr.msra.gmra.mxu1 %v195_v32 }
 0x1de   :  { %v301_v36 = vpop.f32.mrf.mxu1 }
 0x1df   :  { %v302_v37 = vadd.f32 %v453_v35, %v301_v36 }
 0x1e0   :  { %v536_v38 = vpop.f32.mrf.mxu1 }
 0x1e1   :  { %v307_v39 = vmul.f32 0.2, %v302_v37 }
 0x1e2   :  { %v304_v40 = vpop.f32.mrf.mxu1 }
 0x1e3   :  { %v308_v41 = vmax.f32 %v302_v37, %v307_v39 }
 0x1e4   :  { %v537_v42 = vpop.f32.mrf.mxu1 }
 0x1e5   :  { %v309_v43 = vpack.c.bf16 %v308_v41, %v308_v41 }
 0x1e7   :  { %555 = vmatmul.mubr.bf16.vlgmr.msra.gmra.mxu0 %v309_v43 }
 0x2a7   :  { %v415_v45 = vpop.f32.mrf.mxu0 }
 0x2a8   :  { %v416_v46 = vadd.f32 %v462_v44, %v415_v45 }
 0x2a9   :  { %v556_v47 = vpop.f32.mrf.mxu0 }
 0x2aa   :  { %v421_v48 = vsub.f32 0.0, %v416_v46 }
 0x2ab   :  { %v418_v49 = vpop.f32.mrf.mxu0 }
 0x2ac   :  { %v422_v50 = vmul.f32 1.442695, %v421_v48 }
 0x2ad   :  { %v557_v51 = vpop.f32.mrf.mxu0 }
 0x2ae   :  { %591 = vpow2.f32 %v422_v50 }
 0x2bb   :  { %v592_v52 = vpop.eup %591 }
 0x2bc   :  { %v424_v53 = vadd.f32 1.0, %v592_v52 }
 0x2be   :  { %593 = vrcp.f32 %v424_v53 }
 0x2cb   :  { %v594_v54 = vpop.eup %593 }
 0x2cc   :  { %426 = vst [vmem:[#allocation10] sm:$0xff] %v594_v54 }
 0x2cd   :  { %686 = shalt.err (!%p683_p10)
}
 0x2ce   :  { %436 = dma.vmem_to_hbm [thread:$0]  %s434_s24, 128, %s822_s7, [#allocation4]  }
 0x2cf   :  { %701 = dma.done.wait [#allocation4], 128  }
 0x2d0   :  { %702 = vsyncadd [#allocation4], 4294967168 }
 0x2d1   :  { %440 = vsyncpa [#allocation3], 1 }
 0x2d2   :  { %441 = vsyncpa [#allocation6], 1 }
 0x2d3   :  { %442 = vsyncpa [#allocation9], 1 }
 0x2d4   :  { %443 = vsyncpa [#allocation4], 1 }

</bundles_post_ra>
